<compile_context>
chip_gen: v5e
topology: v5e:2x2
jax: 0.10.0
libtpu: 0.0.40
codegen_flags: <defaults>
</compile_context>

<pallas_src>
import jax
import jax.numpy as jnp
from jax.experimental import pallas as pl
from jax.experimental.pallas import tpu as pltpu


def _final_conv_kernel(x_ref, w_ref, b_ref, o_ref):
    # x_ref: (Bn, C_in, TS); w_ref: (C_out, C_in); b_ref: (C_out, 1); o_ref: (Bn, C_out, TS)
    acc = jnp.einsum(
        "oc,bcs->bos", w_ref[...], x_ref[...], preferred_element_type=jnp.float32
    )
    o_ref[...] = (acc + b_ref[...][None]).astype(o_ref.dtype)


def final_conv(x_ncdhw, weight, bias, *, ts_target=65536, target_step_bytes=4 << 20):
    """1x1x1 Conv3d. x_ncdhw: (N, C_in, D, H, W); weight: (C_out, C_in, 1, 1, 1); bias: (C_out,)."""
    N, C_in, D, H, W = x_ncdhw.shape
    C_out = weight.shape[0]
    S = D * H * W
    itemsize = jnp.dtype(x_ncdhw.dtype).itemsize

    # Free reshapes only — no transposes, no extra HBM passes.
    x3 = x_ncdhw.reshape(N, C_in, S)      # (N, C_in, S) channels-first
    w2 = weight.reshape(C_out, C_in)      # (C_out, C_in) — VMEM resident
    b2 = bias.reshape(C_out, 1)           # (C_out, 1) -> lane-broadcast in kernel

    # Spatial tile: large, lane-dense (multiple of 128).  For S <= ts_target the full
    # extent is used (legal for any S and small enough for VMEM); for larger volumes a
    # 128-multiple tile with a ragged, Pallas-masked last block keeps pipelining alive
    # and the VMEM footprint bounded regardless of S.
    ts_target = max(int(ts_target), 128)
    if S <= ts_target:
        ts = S
    else:
        ts = (ts_target // 128) * 128

    # Fatten the block along N for small volumes so per-step bytes reach the multi-MiB
    # range (amortizes the ~0.35 us fixed per-step pipeline overhead).
    bytes_per_n = (C_in + C_out) * ts * itemsize
    bn = max(1, min(N, int(target_step_bytes) // max(bytes_per_n, 1)))
    while N % bn != 0:           # keep N-blocks exact (no ragged leading-dim blocks)
        bn -= 1

    # Keep at least 2 total grid steps when possible so megacore parts (v7x) can shard
    # the grid across both TensorCores.
    if (N // bn) * pl.cdiv(S, ts) < 2 and bn > 1:
        bn = max(1, bn // 2)
        while N % bn != 0:
            bn -= 1

    grid = (N // bn, pl.cdiv(S, ts))

    # Explicit VMEM budget: double-buffered streamed blocks + resident weight/bias,
    # with headroom; capped below v7x's 64 MiB physical VMEM.
    step_bytes = bn * (C_in + C_out) * ts * itemsize
    vmem_needed = 2 * step_bytes + (C_out * C_in + C_out) * 4
    vmem_limit = int(min(max(vmem_needed * 3 // 2, 32 << 20), 56 << 20))

    out3 = pl.pallas_call(
        _final_conv_kernel,
        out_shape=jax.ShapeDtypeStruct((N, C_out, S), x_ncdhw.dtype),
        grid_spec=pltpu.PrefetchScalarGridSpec(
            num_scalar_prefetch=0,
            grid=grid,
            in_specs=[
                pl.BlockSpec((bn, C_in, ts), lambda n, s: (n, 0, s)),   # streamed X
                pl.BlockSpec((C_out, C_in), lambda n, s: (0, 0)),       # resident W
                pl.BlockSpec((C_out, 1), lambda n, s: (0, 0)),          # resident bias
            ],
            out_specs=pl.BlockSpec((bn, C_out, ts), lambda n, s: (n, 0, s)),
        ),
        compiler_params=pltpu.CompilerParams(
            # Independent output blocks along both axes -> shard across the two
            # TensorCores on megacore parts (v7x).
            dimension_semantics=("parallel", "parallel"),
            vmem_limit_bytes=vmem_limit,
        ),
    )(x3, w2, b2)

    # TODO(synk): if the surrounding model runs activations in bf16, stream X / write Y
    # in bf16 (keep f32 accumulation) to halve HBM bytes on this bandwidth-bound kernel.
    return out3.reshape(N, C_out, D, H, W)   # free contiguous reshape back


if __name__ == "__main__":
    # Small shapes consistent with FinalConv(out_channels=4, root_feat_maps=16).
    N, C_in, D, H, W = 2, 16, 8, 8, 8
    C_out = 4

    key = jax.random.PRNGKey(0)
    kx, kw, kb = jax.random.split(key, 3)

    x = jax.random.normal(kx, (N, C_in, D, H, W), dtype=jnp.float32)
    weight = jax.random.normal(kw, (C_out, C_in, 1, 1, 1), dtype=jnp.float32) * 0.1
    bias = jax.random.normal(kb, (C_out,), dtype=jnp.float32) * 0.1

    y = jax.block_until_ready(final_conv(x, weight, bias))

    # Reference: same math as Conv3d with a 1x1x1 kernel.
    ref = jnp.einsum("ncdhw,oc->nodhw", x, weight.reshape(C_out, C_in)) + bias[
        None, :, None, None, None
    ]
    assert y.shape == (N, C_out, D, H, W)
    assert jnp.allclose(y, ref, atol=1e-5, rtol=1e-5)

    print("KERNEL_OK")
</pallas_src>

<mosaic_0001>
module attributes {stable_mosaic.version = 11 : i64} {
  func.func @_final_conv_kernel(%arg0: i32, %arg1: i32, %arg2: memref<1x16x512xf32, #tpu.memory_space<vmem>>, %arg3: memref<4x16xf32, #tpu.memory_space<vmem>>, %arg4: memref<4x1xf32, #tpu.memory_space<vmem>>, %arg5: memref<1x4x512xf32, #tpu.memory_space<vmem>>) attributes {dimension_semantics = [#tpu.dimension_semantics<parallel>, #tpu.dimension_semantics<parallel>], iteration_bounds = array<i64: 2, 1>, scalar_prefetch = 0 : i64, scratch_operands = 0 : i64, tpu.core_type = #tpu.core_type<tc>, window_params = [{transform_indices = @transform_0, window_bounds = array<i64: 1, 16, 512>}, {pipeline_mode = #tpu.pipeline_mode<synchronous>, transform_indices = @transform_1, window_bounds = array<i64: 4, 16>}, {pipeline_mode = #tpu.pipeline_mode<synchronous>, transform_indices = @transform_2, window_bounds = array<i64: 4, 1>}, {transform_indices = @transform_3, window_bounds = array<i64: 1, 4, 512>}]} {
    %c0 = arith.constant 0 : index
    %c0_0 = arith.constant 0 : index
    %0 = vector.load %arg3[%c0, %c0_0] : memref<4x16xf32, #tpu.memory_space<vmem>>, vector<4x16xf32>
    %c0_1 = arith.constant 0 : index
    %c0_2 = arith.constant 0 : index
    %c0_3 = arith.constant 0 : index
    %1 = vector.load %arg2[%c0_1, %c0_2, %c0_3] : memref<1x16x512xf32, #tpu.memory_space<vmem>>, vector<1x16x512xf32>
    "tpu.trace_start"() <{level = 10 : i32, message = "oc,bcs->bos"}> : () -> ()
    %cst = arith.constant dense<0.000000e+00> : vector<1x512x4xf32>
    %2 = tpu.matmul %1, %0, %cst {dimension_numbers = #tpu.dot_dimension_numbers<[1], [1], [0, 2], [0], [0, 0, 0, 2, 1, 0], [], []>} : vector<1x16x512xf32>, vector<4x16xf32>, vector<1x512x4xf32> -> vector<1x512x4xf32>
    %3 = tpu.transpose %2, [0, 2, 1] : vector<1x512x4xf32> -> vector<1x4x512xf32>
    "tpu.trace_stop"() : () -> ()
    %c0_4 = arith.constant 0 : index
    %c0_5 = arith.constant 0 : index
    %4 = vector.load %arg4[%c0_4, %c0_5] : memref<4x1xf32, #tpu.memory_space<vmem>>, vector<4x1xf32>
    %5 = vector.shape_cast %4 : vector<4x1xf32> to vector<1x4x1xf32>
    %6 = vector.broadcast %5 : vector<1x4x1xf32> to vector<1x4x512xf32>
    %7 = arith.addf %3, %6 : vector<1x4x512xf32>
    %c0_6 = arith.constant 0 : index
    %c0_7 = arith.constant 0 : index
    %c0_8 = arith.constant 0 : index
    %8 = vector.load %arg5[%c0_6, %c0_7, %c0_8] : memref<1x4x512xf32, #tpu.memory_space<vmem>>, vector<1x4x512xf32>
    tpu.vector_store %arg5[%c0_6, %c0_7, %c0_8], %7 {strides = array<i32>} : memref<1x4x512xf32, #tpu.memory_space<vmem>>, vector<1x4x512xf32>,
    return
  }
  func.func @transform_0(%arg0: i32, %arg1: i32) -> (i32, i32, i32) {
    %c0_i32 = arith.constant 0 : i32
    %c0_i32_0 = arith.constant 0 : i32
    return %arg0, %c0_i32, %arg1 : i32, i32, i32
  }
  func.func @transform_1(%arg0: i32, %arg1: i32) -> (i32, i32) {
    %c0_i32 = arith.constant 0 : i32
    %c0_i32_0 = arith.constant 0 : i32
    %c0_i32_1 = arith.constant 0 : i32
    return %c0_i32, %c0_i32_0 : i32, i32
  }
  func.func @transform_2(%arg0: i32, %arg1: i32) -> (i32, i32) {
    %c0_i32 = arith.constant 0 : i32
    %c0_i32_0 = arith.constant 0 : i32
    %c0_i32_1 = arith.constant 0 : i32
    return %c0_i32, %c0_i32_0 : i32, i32
  }
  func.func @transform_3(%arg0: i32, %arg1: i32) -> (i32, i32, i32) {
    %c0_i32 = arith.constant 0 : i32
    %c0_i32_0 = arith.constant 0 : i32
    return %arg0, %c0_i32, %arg1 : i32, i32, i32
  }
}

</mosaic_0001>

<bundles_post_ra>
// kernel: tpu_custom_call.1
= control target key start
LH: loop header
LB: loop body
LE: loop exit
PB: predicated region body
PF: predicated region fallthrough
CT: control target
= control target key end

     0   :  { %8 = vsyncpa [#allocation3], 0  ;;  %s1492_s0 = inlined_call_operand.hbm [shape: f32[2,16,512], index: 0, kind: input, shape index: {}]   ;;  %s1493_s1 = inlined_call_operand.vmem [shape: f32[4,16], index: 1, kind: input, shape index: {}]   ;;  %s1494_s2 = inlined_call_operand.vmem [shape: f32[4,1], index: 2, kind: input, shape index: {}]   ;;  %s1495_s3 = inlined_call_operand.hbm [shape: f32[2,4,512], index: 3, kind: output, shape index: {}]  }
   0x1   :  { %10 = vsyncpa [#allocation3 + $0x1], 0 }
   0x2   :  { %11 = vsyncpa [#allocation4], 0 }
   0x3   :  { %13 = vsyncpa [#allocation4 + $0x1], 0  ;;  %s1297_s12 = smov 0   ;;  %s1299_s13 = smov 0  }
   0x4   :  { %s1301_s14 = smov 0   ;;  %s1303_s15 = smov 0  }
   0x5   :  { %s1305_s16 = smov 0   ;;  %s1307_s17 = smov 0  }
   0x6 LB: > { %s1007_s18 = sadd.s32 4294967295, %s1272_s17   ;;  %s1008_s19 = sadd.s32 4294967294, %s1272_s17   ;;  %s1272_s17 = sphi %s1307_s17, %s19_s17   ;;  %s1268_s16 = sphi %s1305_s16, %s1504_s16   ;;  %s1264_s15 = sphi %s1303_s15, %s1503_s15   ;;  %s1260_s14 = sphi %s1301_s14, %s1502_s14   ;;  %s1256_s13 = sphi %s1299_s13, %s1501_s13   ;;  %s1252_s12 = sphi %s1297_s12, %s1500_s12  }
   0x7   : > { %s31_s20 = sadd.s32 1, %s1268_s16  ;;  %s40_s21 = sadd.s32 1, %s1260_s14 }
   0x8   : > { %p33_p0 = scmp.ge.s32.totalorder %s31_s20, 2  ;;  %p47_p1 = scmp.ne.s32.totalorder %s1260_s14, %s1256_s13 }
   0x9   : > { %p48_p2 = scmp.eq.s32.totalorder %s1272_s17, 0  ;;  %p53_p3 = scmp.ne.s32.totalorder %s1256_s13, %s1252_s12 }
   0xa   : > { %s1506_s20 = smov (%p33_p0, %s31_s20), 0  ;;  %p54_p5 = scmp.eq.s32.totalorder %s1007_s18, 0 }
   0xb   : > { %p1338_p4 = por %p48_p2, %p47_p1  ;;  %s35_s23 = ssub.s32 %s1268_s16, %s1506_s20 }
   0xc   : > { %p121_p6 = scmp.eq.s32.totalorder %s1007_s18, 1  ;;  %p38_p7 = scmp.eq.s32.totalorder %s35_s23, 0 }
   0xd   : > { %p1344_p8 = por %p54_p5, %p53_p3  ;;  %p127_p10 = scmp.eq.s32.totalorder %s1008_s19, 1 }
   0xe   : > { %p1348_p9 = por %p121_p6, %p47_p1  ;;  %p1010_p12 = scmp.ge.s32.totalorder %s1272_s17, 2 }
   0xf   : > { %s1353_s26 = scalar_select %p38_p7, %s1260_s14, %s40_s21  }
  0x10   : > { %p1355_p11 = por %p127_p10, %p53_p3  ;;  %p1104_p13 = scmp.lt.s32.totalorder %s1272_s17, 2 }
  0x11   : > { %s153_s28 = sand.u32 1, %s1260_s14   ;;  %s1087_s30 = sshll.u32 %s1268_s16, 6 }
  0x12   : > { %s1011_s29 = sshll.u32 %s153_s28, 6  ;;  %s164_s6 = scalar_lea.hbm %s1492_s0, %s1087_s30 }
  0x13   : > { %s157_s7 = scalar_lea.vmem [#allocation2], %s1011_s29  ;;  %s165_s9 = sshll.u32 %s164_s6, 4  ;;  %s166_s9 = int_to_ptr.hbm [resolvable:$true] %s165_s9 }
  0x14   : > { %s167_s8 = sshll.u32 %s157_s7, 4  ;;  %p1097_p0 = pnand %p1104_p13, %p1338_p4  ;;  %s168_s8 = int_to_ptr.vmem [resolvable:$true] %s167_s8 }
  0x15   : > { %p1014_p1 = scmp.ge.s32.totalorder %s1272_s17, 1  ;;  %s154_s10 = scalar_lea.sflag [#allocation3], %s153_s28 }
  0x16   : > { %s1274_s11 = smov 512   ;;  %s1275_s18 = smov 32  }
  0x17   : > { %1099 = dma.hbm_to_vmem [thread:$0]  (!%p1097_p0), %s166_s9, 1024, %s168_s8, %s154_s10, %s1274_s11, %s1274_s11, %s1275_s18  }
  0x18   : > { %p175_p2 = scmp.lt.s32.totalorder %s1272_s17, 3 }
  0x1a   : > { %p176_p3 = pnand %p1014_p1, %p175_p2 }
  0x1b   : > { %s1371_s19 = sand.u32 (!%p176_p3), 1, %s1256_s13  }
  0x1c   : > { %179 = sbr.rel (%p176_p3) target bundleno = 651 (0x28b), region = 32  ;;  %s1015_s21 = sshll.u32 (!%p176_p3), %s1371_s19, 6 }
  0x1d   : > { %s182_s23 = scalar_lea.sflag (!%p176_p3), [#allocation3], %s1371_s19  ;;  %s185_s29 = scalar_lea.vmem (!%p176_p3), [#allocation2], %s1015_s21 }
  0x21   : > { %1243 = dma.done.wait (%p1344_p8), %s182_s23, 1024  }
  0x22   : > { %1245 = vsyncadd (%p1344_p8), %s182_s23, 4294966272  ;;  %v213_v0 = vld [vmem:[%s185_s29 + $0x8] sm:$0xff]  ;;  %v212_v1 = vld [vmem:[%s185_s29] sm:$0xff]  ;;  %vm348_vm0 = vcmask 130048   ;;  %s1016_s4 = sshll.u32 %s1371_s19, 4  ;;  %s1088_s5 = sshll.u32 %s1264_s15, 4 }
  0x23   : > { %252 = vxpose.xlu1.b32.start [1/2] (short) %v213_v0, 128  ;;  %220 = vxpose.xlu0.b32.start [1/2] (short) %v212_v1, 128  ;;  %v214_v2 = vld [vmem:[%s185_s29 + $0x10] sm:$0xff]  ;;  %v217_v3 = vld [vmem:[%s185_s29 + $0x28] sm:$0xff]  ;;  %v216_v4 = vld [vmem:[%s185_s29 + $0x20] sm:$0xff]  ;;  %s918_s8 = scalar_lea.hbm %s1495_s3, %s1088_s5  ;;  %vm897_vm1 = vcmask 1043456   ;;  %s208_s9 = scalar_lea.vmem [#allocation5], %s1016_s4 }
  0x24   : > { %284 = vxpose.xlu2.b32.start [1/2] (short) %v214_v2, 128  ;;  %v218_v5 = vld [vmem:[%s185_s29 + $0x30] sm:$0xff]  ;;  %v211_v6 = vld [vmem:[%s1493_s1] sm:$0xf]  ;;  %v215_v7 = vld [vmem:[%s185_s29 + $0x18] sm:$0xff]  ;;  %s920_s10 = sshll.u32 %s208_s9, 4  ;;  %s922_s11 = sshll.u32 %s918_s8, 4  ;;  %s921_s10 = int_to_ptr.vmem [resolvable:$true] %s920_s10  ;;  %s923_s11 = int_to_ptr.hbm [resolvable:$true] %s922_s11 }
  0x25   : > { %1089 = vmatpush.xpose.msk.msra.mxu1 %vm348_vm0, %v211_v6  ;;  %1017 = vmatpush.xpose.msk.msra.mxu0 %vm348_vm0, %v211_v6  ;;  %v219_v8 = vld [vmem:[%s185_s29 + $0x38] sm:$0xff]  ;;  %s905_s15 = scalar_lea.sflag [#allocation4], %s1371_s19  ;;  %s1204_s18 = sshra.s32 %s923_s11, 4  ;;  %s1205_s18 = int_to_ptr.hbm [resolvable:$true] %s1204_s18 }
  0x26   : > { %1090 = vmatpush.xpose.msk.msra.mxu2 %vm348_vm0, %v211_v6  ;;  %1091 = vmatpush.xpose.msk.msra.mxu3 %vm348_vm0, %v211_v6  ;;  %s1206_s21 = scalar_lea.hbm %s1205_s18, 16  ;;  %s1210_s22 = scalar_lea.hbm %s1495_s3, 32 }
  0x27   : > { %p1207_p4 = scmp.ne.s32.totalorder %s1205_s18, %s1206_s21  ;;  %p1211_p7 = scmp.lt.s32.totalorder %s1205_s18, %s1495_s3 }
  0x28   : > { %p1212_p8 = scmp.lt.s32.totalorder %s1210_s22, %s1206_s21 }
  0x29   : > { %p1208_p5 = pnand %p1207_p4, %p1348_p9 }
  0x2a   : > { %p1213_p10 = por %p1212_p8, %p1211_p7 }
  0x2b   : > { %253 = vxpose.xlu1.b32.end [2/2] (short) %v217_v3, 128  ;;  %221 = vxpose.xlu0.b32.end [2/2] (short) %v216_v4, 128  ;;  %p1209_p6 = pneg %p1208_p5 }
  0x2c   : > { %285 = vxpose.xlu2.b32.end [2/2] (short) %v218_v5, 128 }
  0x2d   : > { %p1214_p13 = pnand %p1213_p10, %p1209_p6 }
  0xa3   : > { %316 = vxpose.xlu0.b32.start [1/2] (short) %v215_v7, 128 }
  0xab   : > { %317 = vxpose.xlu0.b32.end [2/2] (short) %v219_v8, 128 }
  0xbd   : > { %v300_v25 = vpop.trf.xlu2 }
  0xbe   : > { %1050 = vmatmul.msk.f32.vlgmr.msra.gmra.mxu2 %vm348_vm0, %v300_v25 }
  0xc5   : > { %v301_v28 = vpop.trf.xlu2 }
  0xc6   : > { %1051 = vmatmul.msk.f32.gmra.mxu2 %vm348_vm0, %v301_v28 }
  0xc7   : > { %v268_v9 = vpop.trf.xlu1  ;;  %v236_v10 = vpop.trf.xlu0 }
  0xc8   : > { %1034 = vmatmul.msk.f32.vlgmr.msra.gmra.mxu1 %vm348_vm0, %v268_v9  ;;  %1018 = vmatmul.msk.f32.vlgmr.msra.gmra.mxu0 %vm348_vm0, %v236_v10 }
  0xcd   : > { %v302_v31 = vpop.trf.xlu2 }
  0xce   : > { %1052 = vmatmul.msk.f32.gmra.mxu2 %vm348_vm0, %v302_v31 }
  0xcf   : > { %v269_v11 = vpop.trf.xlu1  ;;  %v237_v12 = vpop.trf.xlu0 }
  0xd0   : > { %1035 = vmatmul.msk.f32.gmra.mxu1 %vm348_vm0, %v269_v11  ;;  %1019 = vmatmul.msk.f32.gmra.mxu0 %vm348_vm0, %v237_v12 }
  0xd5   : > { %v303_v34 = vpop.trf.xlu2 }
  0xd6   : > { %1053 = vmatmul.msk.f32.gmra.mxu2 %vm348_vm0, %v303_v34 }
  0xd7   : > { %v270_v13 = vpop.trf.xlu1  ;;  %v238_v14 = vpop.trf.xlu0 }
  0xd8   : > { %1036 = vmatmul.msk.f32.gmra.mxu1 %vm348_vm0, %v270_v13  ;;  %1020 = vmatmul.msk.f32.gmra.mxu0 %vm348_vm0, %v238_v14 }
  0xdd   : > { %v304_v37 = vpop.trf.xlu2 }
  0xde   : > { %1054 = vmatmul.msk.f32.gmra.mxu2 %vm348_vm0, %v304_v37 }
  0xdf   : > { %v271_v15 = vpop.trf.xlu1  ;;  %v239_v16 = vpop.trf.xlu0 }
  0xe0   : > { %1037 = vmatmul.msk.f32.gmra.mxu1 %vm348_vm0, %v271_v15  ;;  %1021 = vmatmul.msk.f32.gmra.mxu0 %vm348_vm0, %v239_v16 }
  0xe5   : > { %v305_v40 = vpop.trf.xlu2 }
  0xe6   : > { %1055 = vmatmul.msk.f32.gmra.mxu2 %vm348_vm0, %v305_v40 }
  0xe7   : > { %v272_v17 = vpop.trf.xlu1  ;;  %v240_v18 = vpop.trf.xlu0 }
  0xe8   : > { %1038 = vmatmul.msk.f32.gmra.mxu1 %vm348_vm0, %v272_v17  ;;  %1022 = vmatmul.msk.f32.gmra.mxu0 %vm348_vm0, %v240_v18 }
  0xed   : > { %v306_v43 = vpop.trf.xlu2 }
  0xee   : > { %1056 = vmatmul.msk.f32.gmra.mxu2 %vm348_vm0, %v306_v43 }
  0xef   : > { %v273_v19 = vpop.trf.xlu1  ;;  %v241_v20 = vpop.trf.xlu0 }
  0xf0   : > { %1039 = vmatmul.msk.f32.gmra.mxu1 %vm348_vm0, %v273_v19  ;;  %1023 = vmatmul.msk.f32.gmra.mxu0 %vm348_vm0, %v241_v20 }
  0xf5   : > { %v307_v46 = vpop.trf.xlu2 }
  0xf6   : > { %1057 = vmatmul.msk.f32.gmra.mxu2 %vm348_vm0, %v307_v46 }
  0xf7   : > { %v274_v21 = vpop.trf.xlu1  ;;  %v242_v22 = vpop.trf.xlu0 }
  0xf8   : > { %1040 = vmatmul.msk.f32.gmra.mxu1 %vm348_vm0, %v274_v21  ;;  %1024 = vmatmul.msk.f32.gmra.mxu0 %vm348_vm0, %v242_v22 }
  0xfd   : > { %v308_v49 = vpop.trf.xlu2 }
  0xfe   : > { %1058 = vmatmul.msk.f32.gmra.mxu2 %vm348_vm0, %v308_v49 }
  0xff   : > { %v275_v23 = vpop.trf.xlu1  ;;  %v243_v24 = vpop.trf.xlu0 }
 0x100   : > { %1041 = vmatmul.msk.f32.gmra.mxu1 %vm348_vm0, %v275_v23  ;;  %1025 = vmatmul.msk.f32.gmra.mxu0 %vm348_vm0, %v243_v24 }
 0x105   : > { %v309_v53 = vpop.trf.xlu2 }
 0x106   : > { %1059 = vmatmul.msk.f32.gmra.mxu2 %vm348_vm0, %v309_v53 }
 0x107   : > { %v276_v26 = vpop.trf.xlu1  ;;  %v244_v27 = vpop.trf.xlu0 }
 0x108   : > { %1042 = vmatmul.msk.f32.gmra.mxu1 %vm348_vm0, %v276_v26  ;;  %1026 = vmatmul.msk.f32.gmra.mxu0 %vm348_vm0, %v244_v27 }
 0x10d   : > { %v310_v57 = vpop.trf.xlu2 }
 0x10e   : > { %1060 = vmatmul.msk.f32.gmra.mxu2 %vm348_vm0, %v310_v57 }
 0x10f   : > { %v277_v29 = vpop.trf.xlu1  ;;  %v245_v30 = vpop.trf.xlu0 }
 0x110   : > { %1043 = vmatmul.msk.f32.gmra.mxu1 %vm348_vm0, %v277_v29  ;;  %1027 = vmatmul.msk.f32.gmra.mxu0 %vm348_vm0, %v245_v30 }
 0x115   : > { %v311_v61 = vpop.trf.xlu2 }
 0x116   : > { %1061 = vmatmul.msk.f32.gmra.mxu2 %vm348_vm0, %v311_v61 }
 0x117   : > { %v278_v32 = vpop.trf.xlu1  ;;  %v246_v33 = vpop.trf.xlu0 }
 0x118   : > { %1044 = vmatmul.msk.f32.gmra.mxu1 %vm348_vm0, %v278_v32  ;;  %1028 = vmatmul.msk.f32.gmra.mxu0 %vm348_vm0, %v246_v33 }
 0x11d   : > { %v312_v1 = vpop.trf.xlu2 }
 0x11e   : > { %1062 = vmatmul.msk.f32.gmra.mxu2 %vm348_vm0, %v312_v1 }
 0x11f   : > { %v279_v35 = vpop.trf.xlu1  ;;  %v247_v36 = vpop.trf.xlu0 }
 0x120   : > { %1045 = vmatmul.msk.f32.gmra.mxu1 %vm348_vm0, %v279_v35  ;;  %1029 = vmatmul.msk.f32.gmra.mxu0 %vm348_vm0, %v247_v36 }
 0x125   : > { %v313_v5 = vpop.trf.xlu2 }
 0x126   : > { %1063 = vmatmul.msk.f32.gmra.mxu2 %vm348_vm0, %v313_v5 }
 0x127   : > { %v280_v38 = vpop.trf.xlu1  ;;  %v248_v39 = vpop.trf.xlu0 }
 0x128   : > { %1046 = vmatmul.msk.f32.gmra.mxu1 %vm348_vm0, %v280_v38  ;;  %1030 = vmatmul.msk.f32.gmra.mxu0 %vm348_vm0, %v248_v39 }
 0x12d   : > { %v314_v9 = vpop.trf.xlu2 }
 0x12e   : > { %1064 = vmatmul.msk.f32.gmra.mxu2 %vm348_vm0, %v314_v9 }
 0x12f   : > { %v281_v41 = vpop.trf.xlu1  ;;  %v249_v42 = vpop.trf.xlu0 }
 0x130   : > { %1047 = vmatmul.msk.f32.gmra.mxu1 %vm348_vm0, %v281_v41  ;;  %1031 = vmatmul.msk.f32.gmra.mxu0 %vm348_vm0, %v249_v42 }
 0x135   : > { %v315_v13 = vpop.trf.xlu2 }
 0x136   : > { %1065 = vmatmul.msk.f32.gmra.mxu2 %vm348_vm0, %v315_v13 }
 0x137   : > { %v282_v44 = vpop.trf.xlu1  ;;  %v250_v45 = vpop.trf.xlu0 }
 0x138   : > { %1048 = vmatmul.msk.f32.gmra.mxu1 %vm348_vm0, %v282_v44  ;;  %1032 = vmatmul.msk.f32.gmra.mxu0 %vm348_vm0, %v250_v45 }
 0x13f   : > { %v283_v47 = vpop.trf.xlu1  ;;  %v251_v48 = vpop.trf.xlu0 }
 0x140   : > { %1049 = vmatmul.msk.f32.gmra.mxu1 %vm348_vm0, %v283_v47  ;;  %1033 = vmatmul.msk.f32.gmra.mxu0 %vm348_vm0, %v251_v48 }
 0x141   : > { %v657_v19 = vpop.f32.mrf.mxu2 }
 0x142   : > { %817 = vxpose.xlu0.b32.start [1/16] (narrow) %v657_v19, 8 }
 0x145   : > { %v609_v50 = vpop.f32.mrf.mxu1  ;;  %v561_v51 = vpop.f32.mrf.mxu0 }
 0x146   : > { %785 = vxpose.xlu2.b32.start [1/16] (narrow) %v609_v50, 8  ;;  %753 = vxpose.xlu1.b32.start [1/16] (narrow) %v561_v51, 8 }
 0x147   : > { %v332_v52 = vpop.trf.xlu0 }
 0x148   : > { %1066 = vmatmul.msk.f32.vlgmr.msra.gmra.mxu3 %vm348_vm0, %v332_v52 }
 0x149   : > { %v660_v23 = vpop.f32.mrf.mxu2 }
 0x14a   : > { %818 = vxpose.xlu0.b32.cont [2/16] (narrow) %v660_v23, 8 }
 0x14d   : > { %v612_v54 = vpop.f32.mrf.mxu1  ;;  %v564_v55 = vpop.f32.mrf.mxu0 }
 0x14e   : > { %786 = vxpose.xlu2.b32.cont [2/16] (narrow) %v612_v54, 8  ;;  %754 = vxpose.xlu1.b32.cont [2/16] (narrow) %v564_v55, 8 }
 0x14f   : > { %v333_v56 = vpop.trf.xlu0 }
 0x150   : > { %1067 = vmatmul.msk.f32.gmra.mxu3 %vm348_vm0, %v333_v56 }
 0x151   : > { %v663_v27 = vpop.f32.mrf.mxu2 }
 0x152   : > { %819 = vxpose.xlu0.b32.cont [3/16] (narrow) %v663_v27, 8 }
 0x155   : > { %v615_v58 = vpop.f32.mrf.mxu1  ;;  %v567_v59 = vpop.f32.mrf.mxu0 }
 0x156   : > { %787 = vxpose.xlu2.b32.cont [3/16] (narrow) %v615_v58, 8  ;;  %755 = vxpose.xlu1.b32.cont [3/16] (narrow) %v567_v59, 8 }
 0x157   : > { %v334_v60 = vpop.trf.xlu0 }
 0x158   : > { %1068 = vmatmul.msk.f32.gmra.mxu3 %vm348_vm0, %v334_v60 }
 0x159   : > { %v666_v31 = vpop.f32.mrf.mxu2 }
 0x15a   : > { %820 = vxpose.xlu0.b32.cont [4/16] (narrow) %v666_v31, 8 }
 0x15d   : > { %v618_v62 = vpop.f32.mrf.mxu1  ;;  %v570_v63 = vpop.f32.mrf.mxu0 }
 0x15e   : > { %788 = vxpose.xlu2.b32.cont [4/16] (narrow) %v618_v62, 8  ;;  %756 = vxpose.xlu1.b32.cont [4/16] (narrow) %v570_v63, 8 }
 0x15f   : > { %v335_v0 = vpop.trf.xlu0 }
 0x160   : > { %1069 = vmatmul.msk.f32.gmra.mxu3 %vm348_vm0, %v335_v0 }
 0x161   : > { %v669_v35 = vpop.f32.mrf.mxu2 }
 0x162   : > { %821 = vxpose.xlu0.b32.cont [5/16] (narrow) %v669_v35, 8 }
 0x165   : > { %v621_v2 = vpop.f32.mrf.mxu1  ;;  %v573_v3 = vpop.f32.mrf.mxu0 }
 0x166   : > { %789 = vxpose.xlu2.b32.cont [5/16] (narrow) %v621_v2, 8  ;;  %757 = vxpose.xlu1.b32.cont [5/16] (narrow) %v573_v3, 8 }
 0x167   : > { %v336_v4 = vpop.trf.xlu0 }
 0x168   : > { %1070 = vmatmul.msk.f32.gmra.mxu3 %vm348_vm0, %v336_v4  ;;  %v1276_v4 = vmov 0  }
 0x169   : > { %v672_v39 = vpop.f32.mrf.mxu2 }
 0x16a   : > { %822 = vxpose.xlu0.b32.cont [6/16] (narrow) %v672_v39, 8 }
 0x16d   : > { %v624_v6 = vpop.f32.mrf.mxu1  ;;  %v576_v7 = vpop.f32.mrf.mxu0 }
 0x16e   : > { %790 = vxpose.xlu2.b32.cont [6/16] (narrow) %v624_v6, 8  ;;  %758 = vxpose.xlu1.b32.cont [6/16] (narrow) %v576_v7, 8  ;;  %v881_v6 = vld [vmem:[%s1494_s2] sm:$0xf] }
 0x16f   : > { %v337_v8 = vpop.trf.xlu0 }
 0x170   : > { %1071 = vmatmul.msk.f32.gmra.mxu3 %vm348_vm0, %v337_v8 }
 0x171   : > { %v675_v43 = vpop.f32.mrf.mxu2 }
 0x172   : > { %823 = vxpose.xlu0.b32.cont [7/16] (narrow) %v675_v43, 8 }
 0x175   : > { %v627_v10 = vpop.f32.mrf.mxu1  ;;  %v579_v11 = vpop.f32.mrf.mxu0 }
 0x176   : > { %791 = vxpose.xlu2.b32.cont [7/16] (narrow) %v627_v10, 8  ;;  %759 = vxpose.xlu1.b32.cont [7/16] (narrow) %v579_v11, 8 }
 0x177   : > { %v338_v12 = vpop.trf.xlu0 }
 0x178   : > { %1072 = vmatmul.msk.f32.gmra.mxu3 %vm348_vm0, %v338_v12 }
 0x179   : > { %v678_v47 = vpop.f32.mrf.mxu2 }
 0x17a   : > { %824 = vxpose.xlu0.b32.cont [8/16] (narrow) %v678_v47, 8 }
 0x17d   : > { %v630_v14 = vpop.f32.mrf.mxu1  ;;  %v582_v15 = vpop.f32.mrf.mxu0 }
 0x17e   : > { %792 = vxpose.xlu2.b32.cont [8/16] (narrow) %v630_v14, 8  ;;  %760 = vxpose.xlu1.b32.cont [8/16] (narrow) %v582_v15, 8 }
 0x17f   : > { %v339_v16 = vpop.trf.xlu0 }
 0x180   : > { %1073 = vmatmul.msk.f32.gmra.mxu3 %vm348_vm0, %v339_v16 }
 0x181   : > { %v681_v49 = vpop.f32.mrf.mxu2 }
 0x182   : > { %825 = vxpose.xlu0.b32.cont [9/16] (narrow) %v681_v49, 8 }
 0x185   : > { %v633_v17 = vpop.f32.mrf.mxu1  ;;  %v585_v18 = vpop.f32.mrf.mxu0 }
 0x186   : > { %793 = vxpose.xlu2.b32.cont [9/16] (narrow) %v633_v17, 8  ;;  %761 = vxpose.xlu1.b32.cont [9/16] (narrow) %v585_v18, 8 }
 0x187   : > { %v340_v20 = vpop.trf.xlu0 }
 0x188   : > { %1074 = vmatmul.msk.f32.gmra.mxu3 %vm348_vm0, %v340_v20 }
 0x189   : > { %v684_v51 = vpop.f32.mrf.mxu2 }
 0x18a   : > { %826 = vxpose.xlu0.b32.cont [10/16] (narrow) %v684_v51, 8 }
 0x18d   : > { %v636_v21 = vpop.f32.mrf.mxu1  ;;  %v588_v22 = vpop.f32.mrf.mxu0 }
 0x18e   : > { %794 = vxpose.xlu2.b32.cont [10/16] (narrow) %v636_v21, 8  ;;  %762 = vxpose.xlu1.b32.cont [10/16] (narrow) %v588_v22, 8 }
 0x18f   : > { %v341_v24 = vpop.trf.xlu0 }
 0x190   : > { %1075 = vmatmul.msk.f32.gmra.mxu3 %vm348_vm0, %v341_v24 }
 0x191   : > { %v687_v53 = vpop.f32.mrf.mxu2 }
 0x192   : > { %827 = vxpose.xlu0.b32.cont [11/16] (narrow) %v687_v53, 8 }
 0x195   : > { %v639_v25 = vpop.f32.mrf.mxu1  ;;  %v591_v26 = vpop.f32.mrf.mxu0 }
 0x196   : > { %795 = vxpose.xlu2.b32.cont [11/16] (narrow) %v639_v25, 8  ;;  %763 = vxpose.xlu1.b32.cont [11/16] (narrow) %v591_v26, 8 }
 0x197   : > { %v342_v28 = vpop.trf.xlu0 }
 0x198   : > { %1076 = vmatmul.msk.f32.gmra.mxu3 %vm348_vm0, %v342_v28 }
 0x199   : > { %v690_v55 = vpop.f32.mrf.mxu2 }
 0x19a   : > { %828 = vxpose.xlu0.b32.cont [12/16] (narrow) %v690_v55, 8 }
 0x19d   : > { %v642_v29 = vpop.f32.mrf.mxu1  ;;  %v594_v30 = vpop.f32.mrf.mxu0 }
 0x19e   : > { %796 = vxpose.xlu2.b32.cont [12/16] (narrow) %v642_v29, 8  ;;  %764 = vxpose.xlu1.b32.cont [12/16] (narrow) %v594_v30, 8 }
 0x19f   : > { %v343_v32 = vpop.trf.xlu0 }
 0x1a0   : > { %1077 = vmatmul.msk.f32.gmra.mxu3 %vm348_vm0, %v343_v32 }
 0x1a1   : > { %v693_v57 = vpop.f32.mrf.mxu2 }
 0x1a2   : > { %829 = vxpose.xlu0.b32.cont [13/16] (narrow) %v693_v57, 8 }
 0x1a5   : > { %v645_v33 = vpop.f32.mrf.mxu1  ;;  %v597_v34 = vpop.f32.mrf.mxu0 }
 0x1a6   : > { %797 = vxpose.xlu2.b32.cont [13/16] (narrow) %v645_v33, 8  ;;  %765 = vxpose.xlu1.b32.cont [13/16] (narrow) %v597_v34, 8 }
 0x1a7   : > { %v344_v36 = vpop.trf.xlu0 }
 0x1a8   : > { %1078 = vmatmul.msk.f32.gmra.mxu3 %vm348_vm0, %v344_v36 }
 0x1a9   : > { %v696_v59 = vpop.f32.mrf.mxu2 }
 0x1aa   : > { %830 = vxpose.xlu0.b32.cont [14/16] (narrow) %v696_v59, 8 }
 0x1ad   : > { %v648_v37 = vpop.f32.mrf.mxu1  ;;  %v600_v38 = vpop.f32.mrf.mxu0 }
 0x1ae   : > { %798 = vxpose.xlu2.b32.cont [14/16] (narrow) %v648_v37, 8  ;;  %766 = vxpose.xlu1.b32.cont [14/16] (narrow) %v600_v38, 8 }
 0x1af   : > { %v345_v40 = vpop.trf.xlu0 }
 0x1b0   : > { %1079 = vmatmul.msk.f32.gmra.mxu3 %vm348_vm0, %v345_v40 }
 0x1b1   : > { %v699_v61 = vpop.f32.mrf.mxu2 }
 0x1b2   : > { %831 = vxpose.xlu0.b32.cont [15/16] (narrow) %v699_v61, 8 }
 0x1b5   : > { %v651_v41 = vpop.f32.mrf.mxu1  ;;  %v603_v42 = vpop.f32.mrf.mxu0 }
 0x1b6   : > { %799 = vxpose.xlu2.b32.cont [15/16] (narrow) %v651_v41, 8  ;;  %767 = vxpose.xlu1.b32.cont [15/16] (narrow) %v603_v42, 8 }
 0x1b7   : > { %v346_v44 = vpop.trf.xlu0 }
 0x1b8   : > { %1080 = vmatmul.msk.f32.gmra.mxu3 %vm348_vm0, %v346_v44 }
 0x1b9   : > { %v702_v63 = vpop.f32.mrf.mxu2 }
 0x1ba   : > { %832 = vxpose.xlu0.b32.end [16/16] (narrow) %v702_v63, 8 }
 0x1bd   : > { %v654_v45 = vpop.f32.mrf.mxu1  ;;  %v606_v46 = vpop.f32.mrf.mxu0 }
 0x1be   : > { %800 = vxpose.xlu2.b32.end [16/16] (narrow) %v654_v45, 8  ;;  %768 = vxpose.xlu1.b32.end [16/16] (narrow) %v606_v46, 8 }
 0x1bf   : > { %v347_v48 = vpop.trf.xlu0 }
 0x1c0   : > { %1081 = vmatmul.msk.f32.gmra.mxu3 %vm348_vm0, %v347_v48 }
 0x1cb   : > { %v705_v50 = vpop.f32.mrf.mxu3 }
 0x1cc   : > { %849 = vxpose.xlu1.b32.start [1/16] (narrow) %v705_v50, 8 }
 0x1d3   : > { %v708_v52 = vpop.f32.mrf.mxu3 }
 0x1d4   : > { %850 = vxpose.xlu1.b32.cont [2/16] (narrow) %v708_v52, 8 }
 0x1db   : > { %v711_v54 = vpop.f32.mrf.mxu3 }
 0x1dc   : > { %851 = vxpose.xlu1.b32.cont [3/16] (narrow) %v711_v54, 8 }
 0x1df   : > { %v801_v12 = vpop.trf.xlu2 }
 0x1e3   : > { %v714_v56 = vpop.f32.mrf.mxu3 }
 0x1e4   : > { %852 = vxpose.xlu1.b32.cont [4/16] (narrow) %v714_v56, 8 }
 0x1e6   : > { %v833_v14 = vpop.trf.xlu0 }
 0x1ea   : > { %v769_v11 = vpop.trf.xlu1 }
 0x1eb   : > { %v717_v58 = vpop.f32.mrf.mxu3 }
 0x1ec   : > { %853 = vxpose.xlu1.b32.cont [5/16] (narrow) %v717_v58, 8 }
 0x1f3   : > { %v720_v60 = vpop.f32.mrf.mxu3 }
 0x1f4   : > { %854 = vxpose.xlu1.b32.cont [6/16] (narrow) %v720_v60, 8 }
 0x1fb   : > { %v723_v62 = vpop.f32.mrf.mxu3 }
 0x1fc   : > { %855 = vxpose.xlu1.b32.cont [7/16] (narrow) %v723_v62, 8 }
 0x203   : > { %v726_v0 = vpop.f32.mrf.mxu3 }
 0x204   : > { %856 = vxpose.xlu1.b32.cont [8/16] (narrow) %v726_v0, 8 }
 0x20b   : > { %v729_v1 = vpop.f32.mrf.mxu3 }
 0x20c   : > { %857 = vxpose.xlu1.b32.cont [9/16] (narrow) %v729_v1, 8 }
 0x213   : > { %v732_v2 = vpop.f32.mrf.mxu3 }
 0x214   : > { %858 = vxpose.xlu1.b32.cont [10/16] (narrow) %v732_v2, 8 }
 0x21b   : > { %v735_v3 = vpop.f32.mrf.mxu3 }
 0x21c   : > { %859 = vxpose.xlu1.b32.cont [11/16] (narrow) %v735_v3, 8 }
 0x220   : > { %1158 = vset.pattern.permute.xlu2 %v1276_v4 }
 0x221   : > { %1159 = vset.pattern.permute.xlu0 %v1276_v4 }
 0x223   : > { %v738_v5 = vpop.f32.mrf.mxu3 }
 0x224   : > { %860 = vxpose.xlu1.b32.cont [12/16] (narrow) %v738_v5, 8 }
 0x227   : > { %884 = vperm.xlu2 %1158, %v881_v6  }
 0x22b   : > { %v741_v7 = vpop.f32.mrf.mxu3 }
 0x22c   : > { %861 = vxpose.xlu1.b32.cont [13/16] (narrow) %v741_v7, 8 }
 0x233   : > { %v744_v8 = vpop.f32.mrf.mxu3 }
 0x234   : > { %862 = vxpose.xlu1.b32.cont [14/16] (narrow) %v744_v8, 8 }
 0x23b   : > { %v747_v9 = vpop.f32.mrf.mxu3 }
 0x23c   : > { %863 = vxpose.xlu1.b32.cont [15/16] (narrow) %v747_v9, 8 }
 0x243   : > { %v750_v10 = vpop.f32.mrf.mxu3 }
 0x244   : > { %864 = vxpose.xlu1.b32.end [16/16] (narrow) %v750_v10, 8 }
 0x270   : > { %v865_v13 = vpop.trf.xlu1 }
 0x281   : > { %v885_v15 = vpop.permute.xlu2 %884 }
 0x282   : > { %v888_v16 = vadd.f32 %v885_v15, %v801_v12  ;;  %v890_v17 = vadd.f32 %v885_v15, %v865_v13  ;;  %v887_v18 = vadd.f32 %v885_v15, %v769_v11  ;;  %v889_v19 = vadd.f32 %v885_v15, %v833_v14 }
 0x284   : > { %v895_v20 = vrot.slane %v888_v16, 4  ;;  %v896_v21 = vrot.slane %v890_v17, 4 }
 0x286   : > { %v898_v22 = vsel %vm897_vm1, %v887_v18, %v895_v20  ;;  %v899_v23 = vsel %vm897_vm1, %v889_v19, %v896_v21 }
 0x287   : > { %903 = vst [vmem:[%s208_s9 + $0x8] sm:$0xff] %v899_v23 }
 0x288   : > { %902 = vst [vmem:[%s208_s9] sm:$0xff] %v898_v22 }
 0x289   : > { %1217 = shalt.err (!%p1214_p13)
}
 0x28a   : > { %1094 = dma.vmem_to_hbm [thread:$0]  (%p1348_p9), %s921_s10, 256, %s923_s11, %s905_s15  }
 0x28b PF: > { %s934_s19 = sand.u32 1, %s1252_s12   ;;  %p1101_p0 = pnand %p1010_p12, %p1355_p11 }
 0x28c   : > { %s935_s30 = scalar_lea.sflag [#allocation4], %s934_s19 }
 0x28d   : > { %p1102_p1 = pneg %p1101_p0 }
 0x28f   : > { %1247 = dma.done.wait (%p1102_p1), %s935_s30, 256  }
 0x290   : > { %1249 = vsyncadd (%p1102_p1), %s935_s30, 4294967040  ;;  %s19_s17 = sadd.s32 1, %s1272_s17   ;;  %s1500_s12 = smov %s1256_s13 }
 0x291   : > { %p16_p2 = scmp.ge.s32.totalorder %s19_s17, 4   ;;  %s1501_s13 = smov %s1260_s14 }
 0x292   : > { %s1502_s14 = smov %s1353_s26  ;;  %s1503_s15 = smov %s1268_s16 }
 0x293   : > { %s1504_s16 = smov %s1506_s20  ;;  %18 = sbr.rel (!%p16_p2) target bundleno = 6 (0x6), region = 77 }
 0x298   :  { %941 = vsyncpa [#allocation3], 1 }
 0x299   :  { %943 = vsyncpa [#allocation3 + $0x1], 1 }
 0x29a   :  { %944 = vsyncpa [#allocation4], 1 }
 0x29b   :  { %946 = vsyncpa [#allocation4 + $0x1], 1 }

</bundles_post_ra>
